<compile_context>
chip_gen: v7x
topology: tpu7x:2x2x1
jax: 0.10.0
libtpu: 0.0.40
codegen_flags: <defaults>
</compile_context>

<pallas_src>
import functools
import math

import jax
import jax.numpy as jnp
from jax.experimental import pallas as pl
from jax.experimental.pallas import tpu as pltpu


def _round_up(a: int, b: int) -> int:
    return -(-a // b) * b


def _sublane_pack(dtype) -> int:
    # Rows per 32-bit sublane for this dtype: 8 (f32/i32), 16 (bf16), 32 (i8).
    return max(8, 32 // jnp.dtype(dtype).itemsize)


# ---------------------------------------------------------------------------
# Path A: small table resident in VMEM, gather == one-hot matmul on the MXU.
# ---------------------------------------------------------------------------
def _onehot_gather_kernel(ids_ref, table_ref, out_ref):
    """ids_ref:   VMEM (block_tokens, 1) int32
       table_ref: VMEM (vocab_pad, dim_pad)  -- whole table, fetched once
       out_ref:   VMEM (block_tokens, dim_pad)"""
    ids = ids_ref[...]                                             # (bt, 1)
    bt = ids.shape[0]
    vocab = table_ref.shape[0]
    lanes = jax.lax.broadcasted_iota(jnp.int32, (bt, vocab), 1)    # (bt, vocab)
    onehot = (lanes == ids).astype(table_ref.dtype)
    # HIGHEST precision so 1.0 * row is reproduced exactly (no bf16 rounding).
    out_ref[...] = jnp.dot(
        onehot, table_ref[...],
        preferred_element_type=jnp.float32,
        precision=jax.lax.Precision.HIGHEST,
    ).astype(out_ref.dtype)


# ---------------------------------------------------------------------------
# Path B: table in HBM, per-row gather DMAs straight into the output block.
# ---------------------------------------------------------------------------
def _hbm_gather_kernel(ids_ref, table_ref, out_ref, sem, *, block_tokens):
    """ids_ref:   SMEM (n_tokens_padded,) int32  -- scalar-prefetched ids
       table_ref: HBM  (vocab, dim)              -- memory_space=pl.ANY
       out_ref:   VMEM (block_tokens, dim)       -- pipelined output block
       sem:       one DMA semaphore shared by every row copy of this block"""
    base = pl.program_id(0) * block_tokens

    # Issue every row DMA for this block up front so they all overlap.
    # All SMEM id reads happen before the wait (keeps sst->sld forwarding).
    for r in range(block_tokens):                 # static unroll
        tok = ids_ref[base + r]                   # dynamic SMEM scalar read
        pltpu.make_async_copy(
            table_ref.at[pl.ds(tok, 1), :],       # (1, dim) row in HBM
            out_ref.at[pl.ds(r, 1), :],           # row r of the out block
            sem,
        ).start()

    # Single aggregate wait: the block_tokens row copies signal `sem` by
    # exactly the byte count of the full (block_tokens, dim) block.
    pltpu.make_async_copy(out_ref, out_ref, sem).wait()


@functools.partial(jax.jit, static_argnames=("block_tokens", "table_vmem_budget"))
def embedding_forward(embedding, x, *, block_tokens=None,
                      table_vmem_budget: int = 4 * 1024 * 1024):
    """Pallas equivalent of EmbeddingLayer.forward: returns embedding[x],
    shape x.shape + (dim,)."""
    vocab, dim = embedding.shape
    itemsize = jnp.dtype(embedding.dtype).itemsize
    pack = _sublane_pack(embedding.dtype)

    ids = x.reshape(-1).astype(jnp.int32)
    n = ids.shape[0]

    small_table = vocab * _round_up(dim, 128) * itemsize <= table_vmem_budget
    dim_pad = _round_up(dim, 128) if small_table else dim

    # Token-block size: multiple of the sublane pack; double-buffered output
    # block kept <= ~8 MiB so it fits v5e's 16 MiB scoped-VMEM default.
    cap = 256 if block_tokens is None else block_tokens
    bt = min(
        max(pack, _round_up(cap, pack)),
        max(pack, (8 * 1024 * 1024 // (2 * dim_pad * itemsize)) // pack * pack),
        _round_up(max(n, 1), pack),
    )
    if small_table:
        vocab_pad = _round_up(vocab, 128)
        # Also bound the (bt, vocab_pad) one-hot intermediate.
        bt = min(bt, max(pack, (4 * 1024 * 1024 // (4 * vocab_pad)) // pack * pack))
    bt = max(bt, pack)

    n_pad = _round_up(max(n, 1), bt)
    if n_pad != n:
        # Pad with token 0 (a valid row); the extra rows are sliced off below.
        ids = jnp.pad(ids, (0, n_pad - n))

    grid = (n_pad // bt,)
    cparams = pltpu.CompilerParams(dimension_semantics=("parallel",))

    if small_table:
        table = embedding
        if vocab_pad != vocab or dim_pad != dim:
            table = jnp.pad(table, ((0, vocab_pad - vocab), (0, dim_pad - dim)))
        out_padded = pl.pallas_call(
            _onehot_gather_kernel,
            out_shape=jax.ShapeDtypeStruct((n_pad, dim_pad), embedding.dtype),
            grid=grid,
            in_specs=[
                pl.BlockSpec((bt, 1), lambda i: (i, 0)),               # ids
                pl.BlockSpec((vocab_pad, dim_pad), lambda i: (0, 0)),  # table (resident)
            ],
            out_specs=pl.BlockSpec((bt, dim_pad), lambda i: (i, 0)),
            compiler_params=cparams,
        )(ids.reshape(n_pad, 1), table)
    else:
        out_padded = pl.pallas_call(
            functools.partial(_hbm_gather_kernel, block_tokens=bt),
            out_shape=jax.ShapeDtypeStruct((n_pad, dim), embedding.dtype),
            grid_spec=pltpu.PrefetchScalarGridSpec(
                num_scalar_prefetch=1,                        # token ids -> SMEM
                grid=grid,
                in_specs=[pl.BlockSpec(memory_space=pl.ANY)],  # table stays in HBM
                out_specs=pl.BlockSpec((bt, dim), lambda i, ids: (i, 0)),
                scratch_shapes=[pltpu.SemaphoreType.DMA(())],  # one shared sem
            ),
            compiler_params=cparams,
        )(ids, embedding)

    return out_padded[:n, :dim].reshape(x.shape + (dim,))


if __name__ == "__main__":
    key = jax.random.PRNGKey(0)
    k_emb, k_x, k_x2 = jax.random.split(key, 3)

    # Small shapes consistent with the module; dim=128 keeps stores lane-dense.
    vocab_dim, dim = 64, 128
    batch, seq = 2, 8

    # kaiming_uniform_(a=sqrt(5)) on (vocab_dim, dim) -> U(-1/sqrt(dim), 1/sqrt(dim))
    bound = 1.0 / math.sqrt(dim)
    embedding = jax.random.uniform(k_emb, (vocab_dim, dim), jnp.float32,
                                   minval=-bound, maxval=bound)
    x = jax.random.randint(k_x, (batch, seq), 0, vocab_dim, dtype=jnp.int32)

    # Path A: 32 KiB table lives in VMEM; gather via one-hot MXU matmul.
    out = embedding_forward(embedding, x)
    jax.block_until_ready(out)
    ref = jnp.take(embedding, x, axis=0)                    # == embedding[x]
    assert out.shape == (batch, seq, dim), out.shape
    # HIGHEST-precision one-hot matmul reproduces rows to within <=1 ulp.
    assert jnp.allclose(out, ref, rtol=0.0, atol=1e-6), "VMEM one-hot gather mismatch"

    # Path B: force the HBM row-gather path; also exercises ragged padding
    # (15 tokens -> one 16-token block).  DMA gather is bit-exact.
    x2 = jax.random.randint(k_x2, (3, 5), 0, vocab_dim, dtype=jnp.int32)
    out2 = embedding_forward(embedding, x2, table_vmem_budget=0)
    jax.block_until_ready(out2)
    assert out2.shape == (3, 5, dim), out2.shape
    assert jnp.array_equal(out2, jnp.take(embedding, x2, axis=0)), \
        "HBM row-gather mismatch"

    print("KERNEL_OK")
</pallas_src>

<mosaic_0001>
module attributes {stable_mosaic.version = 11 : i64} {
  func.func @_onehot_gather_kernel(%arg0: i32, %arg1: memref<16x1xi32, #tpu.memory_space<vmem>>, %arg2: memref<128x128xf32, #tpu.memory_space<vmem>>, %arg3: memref<16x128xf32, #tpu.memory_space<vmem>>) attributes {dimension_semantics = [#tpu.dimension_semantics<parallel>], iteration_bounds = array<i64: 1>, scalar_prefetch = 0 : i64, scratch_operands = 0 : i64, tpu.core_type = #tpu.core_type<tc>, window_params = [{transform_indices = @transform_0, window_bounds = array<i64: 16, 1>}, {pipeline_mode = #tpu.pipeline_mode<synchronous>, transform_indices = @transform_1, window_bounds = array<i64: 128, 128>}, {transform_indices = @transform_2, window_bounds = array<i64: 16, 128>}]} {
    %c0 = arith.constant 0 : index
    %c0_0 = arith.constant 0 : index
    %0 = vector.load %arg1[%c0, %c0_0] : memref<16x1xi32, #tpu.memory_space<vmem>>, vector<16x1xi32>
    %1 = tpu.iota {dimensions = array<i32: 1>} : vector<16x128xi32>
    %2 = vector.broadcast %0 : vector<16x1xi32> to vector<16x128xi32>
    %3 = arith.cmpi eq, %1, %2 : vector<16x128xi32>
    %4 = arith.extui %3 : vector<16x128xi1> to vector<16x128xi32>
    %5 = arith.sitofp %4 : vector<16x128xi32> to vector<16x128xf32>
    %c0_1 = arith.constant 0 : index
    %c0_2 = arith.constant 0 : index
    %6 = vector.load %arg2[%c0_1, %c0_2] : memref<128x128xf32, #tpu.memory_space<vmem>>, vector<128x128xf32>
    %cst = arith.constant dense<0.000000e+00> : vector<16x128xf32>
    %7 = tpu.matmul %5, %6, %cst {dimension_numbers = #tpu.dot_dimension_numbers<[1], [0], [0], [1], [0, 0, 1, 1], [], []>, precision = #tpu.contract_precision<fp32>} : vector<16x128xf32>, vector<128x128xf32>, vector<16x128xf32> -> vector<16x128xf32>
    %c0_3 = arith.constant 0 : index
    %c0_4 = arith.constant 0 : index
    %8 = vector.load %arg3[%c0_3, %c0_4] : memref<16x128xf32, #tpu.memory_space<vmem>>, vector<16x128xf32>
    tpu.vector_store %arg3[%c0_3, %c0_4], %7 {strides = array<i32>} : memref<16x128xf32, #tpu.memory_space<vmem>>, vector<16x128xf32>,
    return
  }
  func.func @transform_0(%arg0: i32) -> (i32, i32) {
    %c0_i32 = arith.constant 0 : i32
    %c0_i32_0 = arith.constant 0 : i32
    return %arg0, %c0_i32 : i32, i32
  }
  func.func @transform_1(%arg0: i32) -> (i32, i32) {
    %c0_i32 = arith.constant 0 : i32
    %c0_i32_0 = arith.constant 0 : i32
    %c0_i32_1 = arith.constant 0 : i32
    return %c0_i32, %c0_i32_0 : i32, i32
  }
  func.func @transform_2(%arg0: i32) -> (i32, i32) {
    %c0_i32 = arith.constant 0 : i32
    %c0_i32_0 = arith.constant 0 : i32
    return %arg0, %c0_i32 : i32, i32
  }
}

</mosaic_0001>

<bundles_post_ra>
// kernel: embedding_forward.1
= control target key start
LH: loop header
LB: loop body
LE: loop exit
PB: predicated region body
PF: predicated region fallthrough
CT: control target
= control target key end

     0   :  { %v1305_v2 = vmov 0   ;;  %s1656_s0 = inlined_call_operand.vmem [shape: s32[16,1], index: 0, kind: input, shape index: {}]   ;;  %s1657_s1 = inlined_call_operand.vmem [shape: f32[128,128], index: 1, kind: input, shape index: {}]   ;;  %s1658_s2 = inlined_call_operand.hbm [shape: f32[16,128], index: 2, kind: output, shape index: {}]  }
   0x1   :  { %v12_v0 = vld [vmem:[%s1656_s0] sm:$0xff]  ;;  %1280 = vset.pattern.permute.xlu0 %v1305_v2  ;;  %v29_v3 = vld [vmem:[%s1657_s1 + $0x8] sm:$0xff]  ;;  %v30_v5 = vld [vmem:[%s1657_s1 + $0x10] sm:$0xff] }
   0x2   :  { %v28_v1 = vld [vmem:[%s1657_s1] sm:$0xff]  ;;  %v31_v6 = vld [vmem:[%s1657_s1 + $0x18] sm:$0xff]  ;;  %17 = vperm.xlu0 %1280, %v12_v0   ;;  %v48_v7 = vand.u32 4294901760, %v29_v3  ;;  %v51_v8 = vand.u32 4294901760, %v30_v5  ;;  %v33_v11 = vld [vmem:[%s1657_s1 + $0x28] sm:$0xff] }
   0x3   :  { %v45_v4 = vand.u32 4294901760, %v28_v1  ;;  %v54_v9 = vand.u32 4294901760, %v31_v6  ;;  %v32_v10 = vld [vmem:[%s1657_s1 + $0x20] sm:$0xff]  ;;  %v13_v12 = vld [vmem:[%s1656_s0 + $0x8] sm:$0xff]  ;;  %v60_v16 = vand.u32 4294901760, %v33_v11  ;;  %v34_v17 = vld [vmem:[%s1657_s1 + $0x30] sm:$0xff] }
   0x4   :  { %v57_v15 = vand.u32 4294901760, %v32_v10  ;;  %v35_v18 = vld [vmem:[%s1657_s1 + $0x38] sm:$0xff] }
   0x5   :  { %v1350_v13 = vpack.c.bf16 %v48_v7, %v45_v4  ;;  %v1352_v14 = vpack.c.bf16 %v54_v9, %v51_v8 }
   0x6   :  { %20 = vperm.xlu0 %1280, %v13_v12  }
   0x7   :  { %1169 = vmatprep.subr.bf16.mxu0 %v1350_v13 }
   0x8   :  { %7 = vsyncpa [#allocation3], 0  ;;  %1171 = vmatpush3.bf16.msra.mxu0 %v1350_v13  ;;  %1073 = vmatprep.subr.bf16.mxu1 %v1350_v13  ;;  %v1365_v19 = vpack.c.bf16 %v60_v16, %v57_v15  ;;  %v63_v20 = vand.u32 4294901760, %v34_v17  ;;  %v66_v21 = vand.u32 4294901760, %v35_v18  ;;  %v36_v22 = vld [vmem:[%s1657_s1 + $0x40] sm:$0xff]  ;;  %v1374_v23 = vld [vmem:[%s1657_s1 + $0x48] sm:$0xff]  ;;  %v1376_v24 = vsub.f32 %v30_v5, %v51_v8 }
   0x9   :  { %1173 = vmatprep.subr.bf16.mxu0 %v1352_v14  ;;  %1075 = vmatpush3.bf16.msra.mxu1 %v1350_v13  ;;  %v1378_v25 = vsub.f32 %v31_v6, %v54_v9  ;;  %v69_v27 = vand.u32 4294901760, %v36_v22  ;;  %v72_v28 = vand.u32 4294901760, %v1374_v23  ;;  %v1389_v29 = vld [vmem:[%s1657_s1 + $0x50] sm:$0xff]  ;;  %v1396_v31 = vld [vmem:[%s1657_s1 + $0x58] sm:$0xff]  ;;  %v1400_v34 = vsub.f32 %v32_v10, %v57_v15  ;;  %v1407_v36 = vld [vmem:[%s1657_s1 + $0x60] sm:$0xff] }
   0xa   :  { %1077 = vmatprep.subr.bf16.mxu1 %v1352_v14  ;;  %v1383_v26 = vpack.c.bf16 %v66_v21, %v63_v20  ;;  %v162_v30 = vand.u32 4294901760, %v1376_v24  ;;  %v75_v35 = vand.u32 4294901760, %v1389_v29  ;;  %v1412_v39 = vsub.f32 %v33_v11, %v60_v16  ;;  %v1422_v42 = vld [vmem:[%s1657_s1 + $0x68] sm:$0xff]  ;;  %v1451_v58 = vld [vmem:[%s1657_s1 + $0x70] sm:$0xff]  ;;  %v1456_v59 = vld [vmem:[%s1657_s1 + $0x78] sm:$0xff]  ;;  %s1308_s1 = smov [#allocation2]  }
   0xb   :  { %v169_v32 = vand.u32 4294901760, %v1378_v25  ;;  %v1416_v40 = vpack.c.bf16 %v72_v28, %v69_v27  ;;  %v78_v41 = vand.u32 4294901760, %v1396_v31  ;;  %v176_v44 = vand.u32 4294901760, %v1400_v34  ;;  %s735_s16 = sshll.u32 %s1308_s1, 4  ;;  %s736_s16 = int_to_ptr.vmem [resolvable:$true] %s735_s16 }
   0xc   :  { %1175 = vmatpush3.bf16.msra.mxu0 %v1352_v14  ;;  %v163_v33 = vsub.f32 %v1376_v24, %v162_v30  ;;  %v1426_v45 = vsub.f32 %v28_v1, %v45_v4  ;;  %v1428_v46 = vsub.f32 %v29_v3, %v48_v7  ;;  %v183_v48 = vand.u32 4294901760, %v1412_v39  ;;  %s1281_s17 = scalar_lea.vmem %s736_s16, 256  ;;  %p1286_p1 = scmp.lt.s32.totalorder %s736_s16, %s736_s16 }
   0xd   :  { %1177 = vmatprep.subr.bf16.mxu0 %v1365_v19  ;;  %1079 = vmatpush3.bf16.msra.mxu1 %v1352_v14  ;;  %v1409_v37 = vpack.c.bf16 %v169_v32, %v162_v30  ;;  %v170_v38 = vsub.f32 %v1378_v25, %v169_v32  ;;  %v81_v49 = vand.u32 4294901760, %v1407_v36  ;;  %v177_v50 = vsub.f32 %v1400_v34, %v176_v44  ;;  %p1282_p0 = scmp.ne.s32.totalorder %s736_s16, %s1281_s17  ;;  %p1287_p2 = scmp.lt.s32.totalorder %s1281_s17, %s1281_s17 }
   0xe   :  { %1081 = vmatprep.subr.bf16.mxu1 %v1365_v19  ;;  %v164_v43 = vand.u32 4294901760, %v163_v33  ;;  %v1433_v51 = vsub.f32 %v34_v17, %v63_v20  ;;  %v1435_v52 = vsub.f32 %v35_v18, %v66_v21  ;;  %v84_v53 = vand.u32 4294901760, %v1422_v42 }
   0xf   :  { %v171_v47 = vand.u32 4294901760, %v170_v38  ;;  %v1441_v55 = vpack.c.bf16 %v183_v48, %v176_v44  ;;  %v184_v56 = vsub.f32 %v1412_v39, %v183_v48  ;;  %v1446_v57 = vpack.c.bf16 %v78_v41, %v75_v35  ;;  %p1288_p3 = por %p1287_p2, %p1286_p1 }
  0x10   :  { %1179 = vmatpush3.bf16.msra.mxu0 %v1365_v19  ;;  %v178_v60 = vand.u32 4294901760, %v177_v50  ;;  %v190_v61 = vand.u32 4294901760, %v1433_v51  ;;  %v197_v62 = vand.u32 4294901760, %v1435_v52  ;;  %v148_v63 = vand.u32 4294901760, %v1426_v45 }
  0x11   :  { %1181 = vmatprep.subr.bf16.mxu0 %v1383_v26  ;;  %1083 = vmatpush3.bf16.msra.mxu1 %v1365_v19  ;;  %v1439_v54 = vpack.c.bf16 %v171_v47, %v164_v43  ;;  %v155_v0 = vand.u32 4294901760, %v1428_v46  ;;  %v185_v1 = vand.u32 4294901760, %v184_v56  ;;  %v1467_v5 = vsub.f32 %v36_v22, %v69_v27  ;;  %p1289_p4 = pnand %p1288_p3, %p1282_p0 }
  0x12   :  { %1085 = vmatprep.subr.bf16.mxu1 %v1383_v26  ;;  %v1463_v2 = vpack.c.bf16 %v197_v62, %v190_v61  ;;  %v191_v3 = vsub.f32 %v1433_v51, %v190_v61  ;;  %v198_v4 = vsub.f32 %v1435_v52, %v197_v62  ;;  %v87_v6 = vand.u32 4294901760, %v1451_v58 }
  0x13   :  { %v90_v7 = vand.u32 4294901760, %v1456_v59  ;;  %v1472_v8 = vpack.c.bf16 %v185_v1, %v178_v60  ;;  %v1475_v9 = vsub.f32 %v1374_v23, %v72_v28  ;;  %v1479_v10 = vpack.c.bf16 %v84_v53, %v81_v49 }
  0x14   :  { %1183 = vmatpush3.bf16.msra.mxu0 %v1383_v26  ;;  %v192_v11 = vand.u32 4294901760, %v191_v3  ;;  %v199_v12 = vand.u32 4294901760, %v198_v4  ;;  %v204_v15 = vand.u32 4294901760, %v1467_v5  ;;  %v149_v16 = vsub.f32 %v1426_v45, %v148_v63 }
  0x15   :  { %1185 = vmatprep.subr.bf16.mxu0 %v1416_v40  ;;  %1087 = vmatpush3.bf16.msra.mxu1 %v1383_v26  ;;  %v156_v17 = vsub.f32 %v1428_v46, %v155_v0  ;;  %v211_v18 = vand.u32 4294901760, %v1475_v9  ;;  %v217_v22 = vsub.f32 %v1389_v29, %v75_v35  ;;  %v224_v23 = vsub.f32 %v1396_v31, %v78_v41 }
  0x16   :  { %1089 = vmatprep.subr.bf16.mxu1 %v1416_v40  ;;  %v1486_v20 = vpack.c.bf16 %v199_v12, %v192_v11  ;;  %v205_v21 = vsub.f32 %v1467_v5, %v204_v15  ;;  %v1497_v30 = vpack.c.bf16 %v90_v7, %v87_v6  ;;  %v150_v29 = vand.u32 4294901760, %v149_v16 }
  0x17   :  { %v1492_v27 = vpack.c.bf16 %v211_v18, %v204_v15  ;;  %v212_v28 = vsub.f32 %v1475_v9, %v211_v18  ;;  %v218_v33 = vand.u32 4294901760, %v217_v22  ;;  %v225_v38 = vand.u32 4294901760, %v224_v23 }
  0x18   :  { %1187 = vmatpush3.bf16.msra.mxu0 %v1416_v40  ;;  %v206_v32 = vand.u32 4294901760, %v205_v21  ;;  %v157_v35 = vand.u32 4294901760, %v156_v17  ;;  %v231_v47 = vsub.f32 %v1407_v36, %v81_v49  ;;  %v238_v50 = vsub.f32 %v1422_v42, %v84_v53 }
  0x19   :  { %1189 = vmatprep.subr.bf16.mxu0 %v1446_v57  ;;  %1091 = vmatpush3.bf16.msra.mxu1 %v1416_v40  ;;  %v213_v31 = vand.u32 4294901760, %v212_v28  ;;  %v1500_v41 = vpack.c.bf16 %v225_v38, %v218_v33  ;;  %v219_v43 = vsub.f32 %v217_v22, %v218_v33  ;;  %v226_v44 = vsub.f32 %v224_v23, %v225_v38 }
  0x1a   :  { %1093 = vmatprep.subr.bf16.mxu1 %v1446_v57  ;;  %v1200_v56 = vpack.c.bf16 %v155_v0, %v148_v63  ;;  %v232_v62 = vand.u32 4294901760, %v231_v47  ;;  %v1104_v1 = vpack.c.bf16 %v157_v35, %v150_v29  ;;  %v239_v3 = vand.u32 4294901760, %v238_v50 }
  0x1b   :  { %v1504_v48 = vpack.c.bf16 %v213_v31, %v206_v32  ;;  %v220_v60 = vand.u32 4294901760, %v219_v43  ;;  %v227_v61 = vand.u32 4294901760, %v226_v44  ;;  %v245_v49 = vsub.f32 %v1451_v58, %v87_v6 }
  0x1c   :  { %1191 = vmatpush3.bf16.msra.mxu0 %v1446_v57  ;;  %v233_v36 = vsub.f32 %v231_v47, %v232_v62  ;;  %v252_v11 = vsub.f32 %v1456_v59, %v90_v7  ;;  %v1515_v42 = vpack.c.bf16 %v239_v3, %v232_v62  ;;  %v240_v53 = vsub.f32 %v238_v50, %v239_v3 }
  0x1d   :  { %1193 = vmatprep.subr.bf16.mxu0 %v1479_v10  ;;  %1095 = vmatpush3.bf16.msra.mxu1 %v1446_v57  ;;  %v1510_v4 = vpack.c.bf16 %v227_v61, %v220_v60  ;;  %v246_v0 = vand.u32 4294901760, %v245_v49  ;;  %v1524_v21 = vpack.c.bf16 %v1428_v46, %v1426_v45  ;;  %v1528_v28 = vpack.c.bf16 %v1378_v25, %v1376_v24 }
  0x1e   :  { %1097 = vmatprep.subr.bf16.mxu1 %v1479_v10  ;;  %v234_v63 = vand.u32 4294901760, %v233_v36  ;;  %v253_v12 = vand.u32 4294901760, %v252_v11  ;;  %v241_v15 = vand.u32 4294901760, %v240_v53  ;;  %v1532_v32 = vpack.c.bf16 %v1412_v39, %v1400_v34 }
  0x1f   :  { %v247_v17 = vsub.f32 %v245_v49, %v246_v0  ;;  %v1536_v33 = vpack.c.bf16 %v1435_v52, %v1433_v51  ;;  %v1540_v38 = vpack.c.bf16 %v1475_v9, %v1467_v5  ;;  %v1542_v29 = vpack.c.bf16 %v224_v23, %v217_v22 }
  0x20   :  { %1195 = vmatpush3.bf16.msra.mxu0 %v1479_v10  ;;  %v1518_v16 = vpack.c.bf16 %v253_v12, %v246_v0  ;;  %v254_v18 = vsub.f32 %v252_v11, %v253_v12  ;;  %v1128_v58 = vpack.c.bf16 %v241_v15, %v234_v63  ;;  %v1544_v45 = vpack.c.bf16 %v238_v50, %v231_v47 }
  0x21   :  { %1197 = vmatprep.subr.bf16.mxu0 %v1497_v30  ;;  %1099 = vmatpush3.bf16.msra.mxu1 %v1479_v10  ;;  %v248_v6 = vand.u32 4294901760, %v247_v17  ;;  %v1546_v46 = vpack.c.bf16 %v252_v11, %v245_v49  ;;  %v14_v24 = vlaneseq  ;;  %v1306_v34 = vmov 0.0  }
  0x22   :  { %1101 = vmatprep.subr.bf16.mxu1 %v1497_v30  ;;  %v255_v59 = vand.u32 4294901760, %v254_v18  ;;  %v1307_v47 = vmov 1.0  }
  0x23   :  { %v1548_v25 = vand.u32 127, %v14_v24 }
  0x24   :  { %1199 = vmatpush3.bf16.msra.mxu0 %v1497_v30  ;;  %v1520_v7 = vpack.c.bf16 %v255_v59, %v248_v6 }
  0x25   :  { %1201 = vmatprep.subr.bf16.mxu0 %v1200_v56  ;;  %1103 = vmatpush3.bf16.msra.mxu1 %v1497_v30 }
  0x26   :  { %1105 = vmatprep.subr.bf16.mxu1 %v1104_v1 }
  0x81   :  { %v18_v35 = vpop.permute.xlu0 %17 }
  0x82   :  { %vm22_vm0 = vcmp.eq.s32.totalorder %v1548_v25, %v18_v35 }
  0x83   :  { %v746_v39 = vsel %vm22_vm0, 1.0, %v1306_v34 }
  0x84   :  { %v126_v51 = vsub.f32 %v746_v39, %v746_v39 }
  0x85   :  { %v1553_v52 = vpop.permute.xlu0 %20 }
  0x86   :  { %vm23_vm1 = vcmp.eq.s32.totalorder %v1548_v25, %v1553_v52  ;;  %v127_v5 = vand.u32 4294901760, %v126_v51 }
  0x87   :  { %v747_v9 = vsel %vm23_vm1, 1.0, %v1306_v34 }
  0x88   :  { %v1560_v22 = vsub.f32 %v747_v9, %v747_v9  ;;  %999 = vmatprep.mubr.f32.mxu0 %v127_v5  ;;  %v128_v23 = vsub.f32 %v126_v51, %v127_v5 }
  0x8a   :  { %v129_v31 = vand.u32 4294901760, %v128_v23  ;;  %v137_v43 = vand.u32 4294901760, %v1560_v22 }
  0x8c   :  { %894 = vmatprep.mubr.f32.mxu1 %v129_v31  ;;  %1000 = vmatmul.mubr.f32.vlgmr.msra.gmra.mrb[0].mxu0 %v137_v43  ;;  %v138_v44 = vsub.f32 %v1560_v22, %v137_v43 }
  0x8d   :  { %1203 = vmatpush3.bf16.msra.mxu0 %v1200_v56  ;;  %1034 = vmatprep.mubr.msk.f32.mxu0 %vm22_vm0, %v1307_v47 }
  0x8e   :  { %1205 = vmatprep.subr.bf16.mxu0 %v1409_v37  ;;  %v139_v50 = vand.u32 4294901760, %v138_v44 }
  0x90   :  { %895 = vmatmul.mubr.f32.vlgmr.msra.gmra.mrb[0].mxu1 %v139_v50 }
  0x91   :  { %1107 = vmatpush3.bf16.msra.mxu1 %v1104_v1  ;;  %1207 = vmatpush3.bf16.msra.mxu0 %v1409_v37 }
  0x92   :  { %929 = vmatprep.mubr.msk.f32.mxu1 %vm22_vm0, %v1307_v47  ;;  %1109 = vmatprep.subr.bf16.mxu1 %v1439_v54 }
  0x93   :  { %1209 = vmatprep.subr.bf16.mxu0 %v1441_v55 }
  0x95   :  { %1111 = vmatpush3.bf16.msra.mxu1 %v1439_v54  ;;  %1211 = vmatpush3.bf16.msra.mxu0 %v1441_v55 }
  0x96   :  { %1113 = vmatprep.subr.bf16.mxu1 %v1472_v8  ;;  %1213 = vmatprep.subr.bf16.mxu0 %v1463_v2 }
  0x99   :  { %1115 = vmatpush3.bf16.msra.mxu1 %v1472_v8  ;;  %1215 = vmatpush3.bf16.msra.mxu0 %v1463_v2 }
  0x9a   :  { %1117 = vmatprep.subr.bf16.mxu1 %v1486_v20  ;;  %1217 = vmatprep.subr.bf16.mxu0 %v1492_v27 }
  0x9d   :  { %1119 = vmatpush3.bf16.msra.mxu1 %v1486_v20  ;;  %1219 = vmatpush3.bf16.msra.mxu0 %v1492_v27 }
  0x9e   :  { %1121 = vmatprep.subr.bf16.mxu1 %v1504_v48  ;;  %1221 = vmatprep.subr.bf16.mxu0 %v1500_v41 }
  0xa1   :  { %1123 = vmatpush3.bf16.msra.mxu1 %v1504_v48  ;;  %1223 = vmatpush3.bf16.msra.mxu0 %v1500_v41 }
  0xa2   :  { %1125 = vmatprep.subr.bf16.mxu1 %v1510_v4  ;;  %1225 = vmatprep.subr.bf16.mxu0 %v1515_v42 }
  0xa5   :  { %1127 = vmatpush3.bf16.msra.mxu1 %v1510_v4  ;;  %1227 = vmatpush3.bf16.msra.mxu0 %v1515_v42 }
  0xa6   :  { %1129 = vmatprep.subr.bf16.mxu1 %v1128_v58  ;;  %1229 = vmatprep.subr.bf16.mxu0 %v1518_v16 }
  0xa9   :  { %1131 = vmatpush3.bf16.msra.mxu1 %v1128_v58  ;;  %1231 = vmatpush3.bf16.msra.mxu0 %v1518_v16 }
  0xaa   :  { %1133 = vmatprep.subr.bf16.mxu1 %v1520_v7  ;;  %1233 = vmatprep.subr.bf16.mxu0 %v1350_v13 }
  0xac   :  { %1035 = vmatmul.mubr.msk.f32.vlgmr.msra.gmra.mrb[0].mxu0 %vm23_vm1, %v1307_v47 }
  0xad   :  { %1135 = vmatpush3.bf16.msra.mxu1 %v1520_v7  ;;  %1235 = vmatpush3.bf16.msra.mxu0 %v1350_v13 }
  0xae   :  { %1069 = vmatprep.mubr.msk.f32.mxu0 %vm22_vm0, %v1307_v47  ;;  %1137 = vmatprep.subr.bf16.mxu1 %v1524_v21 }
  0xaf   :  { %1237 = vmatprep.subr.bf16.mxu0 %v1352_v14 }
  0xb0   :  { %930 = vmatmul.mubr.msk.f32.vlgmr.msra.gmra.mrb[0].mxu1 %vm23_vm1, %v1307_v47 }
  0xb1   :  { %1139 = vmatpush3.bf16.msra.mxu1 %v1524_v21  ;;  %964 = vmatprep.mubr.f32.mxu1 %v126_v51 }
  0xb2   :  { %1239 = vmatpush3.bf16.msra.mxu0 %v1352_v14  ;;  %1141 = vmatprep.subr.bf16.mxu1 %v1528_v28 }
  0xb3   :  { %1241 = vmatprep.subr.bf16.mxu0 %v1365_v19 }
  0xb5   :  { %1143 = vmatpush3.bf16.msra.mxu1 %v1528_v28 }
  0xb6   :  { %1243 = vmatpush3.bf16.msra.mxu0 %v1365_v19  ;;  %1145 = vmatprep.subr.bf16.mxu1 %v1532_v32 }
  0xb7   :  { %1245 = vmatprep.subr.bf16.mxu0 %v1383_v26 }
  0xb9   :  { %1147 = vmatpush3.bf16.msra.mxu1 %v1532_v32 }
  0xba   :  { %1247 = vmatpush3.bf16.msra.mxu0 %v1383_v26  ;;  %1149 = vmatprep.subr.bf16.mxu1 %v1536_v33 }
  0xbb   :  { %1249 = vmatprep.subr.bf16.mxu0 %v1416_v40 }
  0xbd   :  { %1151 = vmatpush3.bf16.msra.mxu1 %v1536_v33 }
  0xbe   :  { %1251 = vmatpush3.bf16.msra.mxu0 %v1416_v40  ;;  %1153 = vmatprep.subr.bf16.mxu1 %v1540_v38 }
  0xbf   :  { %1253 = vmatprep.subr.bf16.mxu0 %v1446_v57 }
  0xc1   :  { %1155 = vmatpush3.bf16.msra.mxu1 %v1540_v38 }
  0xc2   :  { %1255 = vmatpush3.bf16.msra.mxu0 %v1446_v57  ;;  %1157 = vmatprep.subr.bf16.mxu1 %v1542_v29 }
  0xc3   :  { %1257 = vmatprep.subr.bf16.mxu0 %v1479_v10 }
  0xc5   :  { %1159 = vmatpush3.bf16.msra.mxu1 %v1542_v29 }
  0xc6   :  { %1259 = vmatpush3.bf16.msra.mxu0 %v1479_v10  ;;  %1161 = vmatprep.subr.bf16.mxu1 %v1544_v45 }
  0xc7   :  { %1261 = vmatprep.subr.bf16.mxu0 %v1497_v30 }
  0xc9   :  { %1163 = vmatpush3.bf16.msra.mxu1 %v1544_v45 }
  0xca   :  { %1263 = vmatpush3.bf16.msra.mxu0 %v1497_v30  ;;  %1165 = vmatprep.subr.bf16.mxu1 %v1546_v46 }
  0xcd   :  { %1070 = vmatmul.mubr.msk.f32.vlgmr.msra.gmra.mrb[0].mxu0 %vm23_vm1, %v1307_v47  ;;  %1167 = vmatpush3.bf16.msra.mxu1 %v1546_v46 }
  0xd0   :  { %965 = vmatmul.mubr.f32.vlgmr.msra.gmra.mrb[0].mxu1 %v1560_v22 }
 0x1a0   :  { %v1071_v13 = vpop.f32.mrb[0].mxu0 }
 0x1a1   :  { %v718_v14 = vpop.f32.mrb[1].mxu0 }
 0x1a3   :  { %v966_v19 = vpop.f32.mrb[0].mxu1 }
 0x1a4   :  { %v1264_v26 = vadd.f32 %v1071_v13, %v966_v19  ;;  %v402_v37 = vpop.f32.mrb[1].mxu1 }
 0x1a5   :  { %v1265_v40 = vadd.f32 %v718_v14, %v402_v37 }
 0x1a6   :  { %729 = vst [vmem:[#allocation2 + $0x8] sm:$0xff] %v1264_v26 }
 0x1a7   :  { %728 = vst [vmem:[#allocation2] sm:$0xff] %v1265_v40 }
 0x1a8   :  { %1292 = shalt.err (!%p1289_p4)
}
 0x1a9   :  { %s1293_s20 = scalar_lea.hbm %s1658_s2, 256 }
 0x1aa   :  { %p1294_p5 = scmp.ne.s32.totalorder %s1658_s2, %s1293_s20  ;;  %p1297_p6 = scmp.lt.u32.totalorder %s1293_s20, %s1658_s2 }
 0x1ac   :  { %p1299_p7 = pnand %p1297_p6, %p1294_p5 }
 0x1ae   :  { %1302 = shalt.err (!%p1299_p7)
}
 0x1af   :  { %s1309_s25 = smov 128   ;;  %s1310_s26 = smov 8  }
 0x1b0   :  { %741 = dma.vmem_to_hbm [thread:$0]  %s736_s16, 256, %s1658_s2, [#allocation3], %s1309_s25, %s1309_s25, %s1310_s26  }
 0x1b1   :  { %1303 = dma.done.wait [#allocation3], 256  }
 0x1b2   :  { %1304 = vsyncadd [#allocation3], 4294967040 }
 0x1b3   :  { %745 = vsyncpa [#allocation3], 1 }

</bundles_post_ra>
